<compile_context>
chip_gen: v7x
topology: tpu7x:2x2x1
jax: 0.10.0
libtpu: 0.0.40
codegen_flags: <defaults>
</compile_context>

<pallas_src>
import numpy as np
import jax
import jax.numpy as jnp
from jax.experimental import pallas as pl
from jax.experimental.pallas import tpu as pltpu

_C_COMMISSION = 0.0025  # the only "parameter" of the module (self.c)


def _reward_loss_kernel(x_ref, lw_ref, y_prev_ref, y_last_ref, reward_ref, pv_ref):
    # x_ref, lw_ref          : (B, M) current / previous portfolio weights
    # y_prev_ref, y_last_ref : (B, M) prices at the second-to-last / last time step
    x = x_ref[...].astype(jnp.float32)            # (B, M)
    lw = lw_ref[...].astype(jnp.float32)          # (B, M)
    y_prev = y_prev_ref[...].astype(jnp.float32)  # (B, M)
    y_last = y_last_ref[...].astype(jnp.float32)  # (B, M)

    # price change of the last step: reciprocal-multiply instead of a VALU divide.
    changes = y_last * pl.reciprocal(y_prev)      # (B, M)
    num = changes * lw                            # (B, M)

    # torch: wt_prime = num / torch.sum(num, dim=1)  -- the (B,)-shaped sums broadcast
    # along the LAST (asset) axis, i.e. element [b, m] is divided by the row-sum of
    # row m (this only type-checks when B == M or B == 1, exactly as in PyTorch).
    denom_col = jnp.sum(num, axis=1, keepdims=True)   # (B, 1) == (M, 1), lane reduce

    # Realise that broadcast in the transposed layout (assets on sublanes, batch on
    # lanes): the denominator becomes a per-sublane column that broadcasts for free,
    # and the output-feeding reductions become sublane reduces -> lane-dense (1, B).
    num_t = jnp.transpose(num)                        # (M, B)
    x_t = jnp.transpose(x)                            # (M, B)
    changes_t = jnp.transpose(changes)                # (M, B)

    wt_prime_t = num_t * pl.reciprocal(denom_col)     # (M, B)

    mu = 1.0 - jnp.sum(jnp.abs(wt_prime_t - x_t),
                       axis=0, keepdims=True) * _C_COMMISSION     # (1, B)
    pv = jnp.sum(changes_t * x_t, axis=0, keepdims=True) * mu     # (1, B) lane-dense

    pv_ref[...] = pv                                              # unmasked lane store
    reward_ref[...] = -jnp.mean(jnp.log(pv), keepdims=True)       # (1, 1)


@jax.jit
def reward_loss(x, y, last_w):
    """Pallas implementation of RewardLoss.forward(x, y, last_w)."""
    B, C, M, T = y.shape

    # price_change glue: only the last two time steps of y survive the .view(-1, M).
    # Slice them out here (two tiny fused XLA strided slices under jit) and hand them
    # to the kernel in their natural (B*C, M) layout.
    # TODO(synk): folding this time-step selection into the kernel needs a lane->sublane
    # relayout of y that is not worth doing in Mosaic for two rows; it stays fused here.
    y_flat = y.reshape(-1, M, T)                       # (B*C, M, T)
    y_last = y_flat[:, :, T - 1]                       # (B*C, M)
    if T >= 2:
        y_prev = y_flat[:, :, T - 2]                   # (B*C, M)
    else:
        # T == 1: price_change leaves prices untouched -> previous step is all-ones.
        y_prev = jnp.ones_like(y_last)

    Bf = y_flat.shape[0]   # rows the torch .view(-1, M) produces (== B for C == 1)

    reward2d, pv_row = pl.pallas_call(
        _reward_loss_kernel,
        out_shape=(jax.ShapeDtypeStruct((1, 1), jnp.float32),
                   jax.ShapeDtypeStruct((1, Bf), jnp.float32)),
        in_specs=[pl.BlockSpec(memory_space=pltpu.MemorySpace.VMEM)] * 4,
        out_specs=(pl.BlockSpec(memory_space=pltpu.MemorySpace.VMEM),
                   pl.BlockSpec(memory_space=pltpu.MemorySpace.VMEM)),
    )(x, last_w, y_prev, y_last)

    reward = reward2d[0, 0]
    portfolio_value = jnp.squeeze(pv_row)   # matches torch .squeeze()
    return reward, portfolio_value


# ---------------- pure-JAX reference (mirrors the PyTorch code) ----------------
def _reward_loss_ref(x, y, last_w, c=_C_COMMISSION):
    M = y.shape[2]
    if y.shape[-1] >= 2:
        ch = (y[..., -1] / y[..., -2]).reshape(-1, M)
    else:
        ch = y[..., -1].reshape(-1, M)
    wt_prime = ch * last_w / jnp.sum(ch * last_w, axis=1)      # same broadcast as torch
    mu = 1.0 - jnp.sum(jnp.abs(wt_prime - x), axis=1) * c
    pv = jnp.sum(ch * x, axis=1) * mu
    return -jnp.mean(jnp.log(pv)), jnp.squeeze(pv)


if __name__ == "__main__":
    key = jax.random.PRNGKey(0)
    n_symbols = 7                 # synthetic symbols list (datautils.get_symbols_list())
    M = n_symbols + 1             # symbols + cash
    B = M                         # batch == assets: required by the module's own broadcast
    T = 16                        # time window (only the last two steps matter)

    k1, k2, k3 = jax.random.split(key, 3)
    y = jax.random.uniform(k1, (B, 1, M, T), jnp.float32, 0.5, 1.5)        # positive prices
    x = jax.nn.softmax(jax.random.normal(k2, (B, M), jnp.float32), axis=1) # current weights
    last_w = jax.nn.softmax(jax.random.normal(k3, (B, M), jnp.float32), axis=1)

    reward, pv = reward_loss(x, y, last_w)
    jax.block_until_ready((reward, pv))

    reward_ref, pv_ref = _reward_loss_ref(x, y, last_w)
    assert np.allclose(np.asarray(reward), np.asarray(reward_ref), rtol=1e-5, atol=5e-6), (
        np.asarray(reward), np.asarray(reward_ref))
    assert np.allclose(np.asarray(pv), np.asarray(pv_ref), rtol=1e-5, atol=5e-6), (
        np.asarray(pv), np.asarray(pv_ref))

    print("KERNEL_OK")
</pallas_src>

<mosaic_0001>
module attributes {stable_mosaic.version = 11 : i64} {
  func.func @_reward_loss_kernel(%arg0: memref<8x8xf32, #tpu.memory_space<vmem>>, %arg1: memref<8x8xf32, #tpu.memory_space<vmem>>, %arg2: memref<8x8xf32, #tpu.memory_space<vmem>>, %arg3: memref<8x8xf32, #tpu.memory_space<vmem>>, %arg4: memref<1x1xf32, #tpu.memory_space<vmem>>, %arg5: memref<1x8xf32, #tpu.memory_space<vmem>>) attributes {dimension_semantics = [], scalar_prefetch = 0 : i64, scratch_operands = 0 : i64, tpu.core_type = #tpu.core_type<tc>} {
    %c0 = arith.constant 0 : index
    %c0_0 = arith.constant 0 : index
    %0 = vector.load %arg0[%c0, %c0_0] : memref<8x8xf32, #tpu.memory_space<vmem>>, vector<8x8xf32>
    %c0_1 = arith.constant 0 : index
    %c0_2 = arith.constant 0 : index
    %1 = vector.load %arg1[%c0_1, %c0_2] : memref<8x8xf32, #tpu.memory_space<vmem>>, vector<8x8xf32>
    %c0_3 = arith.constant 0 : index
    %c0_4 = arith.constant 0 : index
    %2 = vector.load %arg2[%c0_3, %c0_4] : memref<8x8xf32, #tpu.memory_space<vmem>>, vector<8x8xf32>
    %c0_5 = arith.constant 0 : index
    %c0_6 = arith.constant 0 : index
    %3 = vector.load %arg3[%c0_5, %c0_6] : memref<8x8xf32, #tpu.memory_space<vmem>>, vector<8x8xf32>
    %4 = tpu.reciprocal %2 : vector<8x8xf32> -> vector<8x8xf32>
    %5 = arith.mulf %3, %4 : vector<8x8xf32>
    %6 = arith.mulf %5, %1 : vector<8x8xf32>
    %cst = arith.constant dense<0.000000e+00> : vector<8xf32>
    %7 = vector.multi_reduction <add>, %6, %cst [1] : vector<8x8xf32> to vector<8xf32>
    %8 = vector.shape_cast %7 : vector<8xf32> to vector<8x1xf32>
    %9 = tpu.transpose %6, [1, 0] : vector<8x8xf32> -> vector<8x8xf32>
    %10 = tpu.transpose %0, [1, 0] : vector<8x8xf32> -> vector<8x8xf32>
    %11 = tpu.transpose %5, [1, 0] : vector<8x8xf32> -> vector<8x8xf32>
    %12 = tpu.reciprocal %8 : vector<8x1xf32> -> vector<8x1xf32>
    %13 = vector.broadcast %12 : vector<8x1xf32> to vector<8x8xf32>
    %14 = arith.mulf %9, %13 : vector<8x8xf32>
    %15 = arith.subf %14, %10 : vector<8x8xf32>
    %16 = math.absf %15 : vector<8x8xf32>
    %cst_7 = arith.constant dense<0.000000e+00> : vector<8xf32>
    %17 = vector.multi_reduction <add>, %16, %cst_7 [0] : vector<8x8xf32> to vector<8xf32>
    %18 = vector.shape_cast %17 : vector<8xf32> to vector<1x8xf32>
    %cst_8 = arith.constant 2.500000e-03 : f32
    %19 = vector.broadcast %cst_8 : f32 to vector<1x8xf32>
    %20 = arith.mulf %18, %19 : vector<1x8xf32>
    %cst_9 = arith.constant 1.000000e+00 : f32
    %21 = vector.broadcast %cst_9 : f32 to vector<1x8xf32>
    %22 = arith.subf %21, %20 : vector<1x8xf32>
    %23 = arith.mulf %11, %10 : vector<8x8xf32>
    %cst_10 = arith.constant dense<0.000000e+00> : vector<8xf32>
    %24 = vector.multi_reduction <add>, %23, %cst_10 [0] : vector<8x8xf32> to vector<8xf32>
    %25 = vector.shape_cast %24 : vector<8xf32> to vector<1x8xf32>
    %26 = arith.mulf %25, %22 : vector<1x8xf32>
    %c0_11 = arith.constant 0 : index
    %c0_12 = arith.constant 0 : index
    %27 = vector.load %arg5[%c0_11, %c0_12] : memref<1x8xf32, #tpu.memory_space<vmem>>, vector<1x8xf32>
    tpu.vector_store %arg5[%c0_11, %c0_12], %26 {strides = array<i32>} : memref<1x8xf32, #tpu.memory_space<vmem>>, vector<1x8xf32>,
    %28 = math.log %26 : vector<1x8xf32>
    %29 = vector.shape_cast %28 : vector<1x8xf32> to vector<1x1x8xf32>
    %cst_13 = arith.constant dense<0.000000e+00> : vector<1xf32>
    %30 = vector.multi_reduction <add>, %29, %cst_13 [1, 2] : vector<1x1x8xf32> to vector<1xf32>
    %31 = vector.shape_cast %30 : vector<1xf32> to vector<1x1x1xf32>
    %32 = vector.extract %31[0, 0, 0] : f32 from vector<1x1x1xf32>
    %33 = vector.broadcast %32 : f32 to vector<1x1xf32>
    %cst_14 = arith.constant 8.000000e+00 : f32
    %34 = vector.broadcast %cst_14 : f32 to vector<1x1xf32>
    %35 = arith.divf %33, %34 : vector<1x1xf32>
    %cst_15 = arith.constant 0.000000e+00 : f32
    %36 = vector.broadcast %cst_15 : f32 to vector<1x1xf32>
    %37 = arith.subf %36, %35 : vector<1x1xf32>
    %c0_16 = arith.constant 0 : index
    %c0_17 = arith.constant 0 : index
    %38 = vector.load %arg4[%c0_16, %c0_17] : memref<1x1xf32, #tpu.memory_space<vmem>>, vector<1x1xf32>
    tpu.vector_store %arg4[%c0_16, %c0_17], %37 {strides = array<i32>} : memref<1x1xf32, #tpu.memory_space<vmem>>, vector<1x1xf32>,
    return
  }
}

</mosaic_0001>

<bundles_post_ra>
// kernel: reward_loss.1
= control target key start
LH: loop header
LB: loop body
LE: loop exit
PB: predicated region body
PF: predicated region fallthrough
CT: control target
= control target key end

     0   :  { %11 = vsyncpa [#allocation3], 0  ;;  %s328_s0 = inlined_call_operand.vmem [shape: f32[8,8], index: 0, kind: input, shape index: {}]   ;;  %s329_s1 = inlined_call_operand.vmem [shape: f32[8,8], index: 1, kind: input, shape index: {}]   ;;  %s330_s2 = inlined_call_operand.vmem [shape: f32[8,8], index: 2, kind: input, shape index: {}]   ;;  %s331_s3 = inlined_call_operand.vmem [shape: f32[8,8], index: 3, kind: input, shape index: {}]   ;;  %s332_s4 = inlined_call_operand.hbm [shape: f32[1,1], index: 4, kind: output, shape index: {0}]   ;;  %s333_s5 = inlined_call_operand.hbm [shape: f32[1,8], index: 5, kind: output, shape index: {1}]  }
   0x1   :  { %v23_v0 = vld [vmem:[%s330_s2] sm:$0xff] }
   0x2   :  { %203 = vrcp.f32 %v23_v0  ;;  %v21_v1 = vld [vmem:[%s328_s0] sm:$0xff] }
   0x3   :  { %12 = vsyncpa [#allocation5], 0  ;;  %64 = vxpose.xlu1.b32.start.end [1/1] (short) (narrow) %v21_v1, 8  ;;  %v24_v2 = vld [vmem:[%s331_s3] sm:$0xff]  ;;  %vm28_vm0 = vcmask 64512   ;;  %vm150_vm1 = vcmask 57344  }
   0x4   :  { %v22_v4 = vld [vmem:[%s329_s1] sm:$0xff]  ;;  %s257_s0 = smov [#allocation4]  }
   0x5   :  { %s186_s1 = sshll.u32 %s257_s0, 4  ;;  %s187_s1 = int_to_ptr.vmem [resolvable:$true] %s186_s1 }
   0x6   :  { %s209_s2 = scalar_lea.vmem %s187_s1, 16  ;;  %s213_s3 = scalar_lea.vmem %s187_s1, 32 }
   0x7   :  { %p210_p0 = scmp.ne.s32.totalorder %s187_s1, %s209_s2  ;;  %p214_p1 = scmp.lt.s32.totalorder %s187_s1, %s187_s1 }
   0x8   :  { %p215_p2 = scmp.lt.s32.totalorder %s213_s3, %s209_s2 }
   0xa   :  { %p216_p3 = por %p215_p2, %p214_p1 }
   0xc   :  { %v204_v3 = vpop.eup %203  ;;  %p217_p4 = pnand %p216_p3, %p210_p0 }
   0xd   :  { %v26_v5 = vmul.f32 %v204_v3, %v24_v2 }
   0xf   :  { %v27_v6 = vmul.f32 %v26_v5, %v22_v4  ;;  %96 = vxpose.xlu1.b32.start.end [1/1] (short) (narrow) %v26_v5, 8 }
  0x11   :  { %v29_v7 = vsel %vm28_vm0, %v27_v6, 0.0 }
  0x12   :  { %30 = vadd.xlane.f32.xlu0 %v29_v7 }
  0x3f   :  { %32 = vxpose.xlu0.b32.start.end [1/1] (short) (narrow) %v27_v6, 8 }
  0x83   :  { %v80_v8 = vpop.trf.xlu1 }
  0x8f   :  { %v112_v10 = vpop.trf.xlu1 }
  0x90   :  { %v141_v11 = vmul.f32 %v112_v10, %v80_v8 }
  0x92   :  { %v142_v12 = vsel %vm28_vm0, %v141_v11, 0.0 }
  0x93   :  { %v143_v16 = vrot.slane %v142_v12, 4 }
  0x95   :  { %v144_v19 = vadd.f32 %v143_v16, %v142_v12 }
  0x97   :  { %v145_v22 = vrot.slane %v144_v19, 2 }
  0x99   :  { %v146_v25 = vadd.f32 %v145_v22, %v144_v19 }
  0x9b   :  { %v147_v28 = vrot.slane %v146_v25, 1 }
  0x9d   :  { %v148_v31 = vadd.f32 %v147_v28, %v146_v25 }
  0x9f   :  { %v31_v9 = vpop.xlane.xlu0 %30 }
  0xa0   :  { %205 = vrcp.f32 %v31_v9 }
  0xaa   :  { %v206_v13 = vpop.eup %205 }
  0xbf   :  { %v48_v14 = vpop.trf.xlu0 }
  0xc0   :  { %v129_v15 = vmul.f32 %v206_v13, %v48_v14 }
  0xc2   :  { %v130_v17 = vsub.f32 %v129_v15, %v80_v8 }
  0xc4   :  { %v131_v18 = vand.u32 2147483647, %v130_v17 }
  0xc6   :  { %v132_v20 = vsel %vm28_vm0, %v131_v18, 0.0 }
  0xc7   :  { %v133_v21 = vrot.slane %v132_v20, 4 }
  0xc9   :  { %v134_v23 = vadd.f32 %v133_v21, %v132_v20 }
  0xcb   :  { %v135_v24 = vrot.slane %v134_v23, 2 }
  0xcd   :  { %v136_v26 = vadd.f32 %v135_v24, %v134_v23 }
  0xcf   :  { %v137_v27 = vrot.slane %v136_v26, 1 }
  0xd1   :  { %v138_v29 = vadd.f32 %v137_v27, %v136_v26 }
  0xd3   :  { %v139_v30 = vmul.f32 0.0025, %v138_v29 }
  0xd5   :  { %v140_v32 = vsub.f32 1.0, %v139_v30 }
  0xd7   :  { %v149_v33 = vmul.f32 %v148_v31, %v140_v32 }
  0xd9   :  { %207 = vlog2.f32 %v149_v33  ;;  %151 = vst.msk [vmem:[#allocation4] sm:$0x1] %vm150_vm1, %v149_v33 }
  0xe3   :  { %v208_v34 = vpop.eup %207 }
  0xe4   :  { %v153_v35 = vmul.f32 0.6931472, %v208_v34 }
  0xe6   :  { %v154_v36 = vsel %vm150_vm1, %v153_v35, 0.0 }
  0xe7   :  { %155 = vadd.xlane.f32.xlu1 %v154_v36 }
  0xe8   :  { %220 = shalt.err (!%p217_p4)
}
  0xe9   :  { %s221_s28 = scalar_lea.hbm %s333_s5, 16 }
  0xea   :  { %p222_p5 = scmp.ne.s32.totalorder %s333_s5, %s221_s28  ;;  %p225_p6 = scmp.lt.u32.totalorder %s221_s28, %s333_s5 }
  0xec   :  { %p227_p7 = pnand %p225_p6, %p222_p5 }
  0xee   :  { %230 = shalt.err (!%p227_p7)
}
  0xef   :  { %189 = dma.vmem_to_hbm [thread:$0]  %s187_s1, 16, %s333_s5, [#allocation5]   ;;  %vm168_vm2 = vcmask 0  }
  0xf0   :  { %s258_s11 = smov [#allocation2]  }
  0xf1   :  { %s176_s12 = sshll.u32 %s258_s11, 4  ;;  %s177_s12 = int_to_ptr.vmem [resolvable:$true] %s176_s12 }
  0xf2   :  { %s231_s13 = scalar_lea.vmem %s177_s12, 16  ;;  %s235_s5 = scalar_lea.vmem %s177_s12, 32 }
  0xf3   :  { %p232_p8 = scmp.ne.s32.totalorder %s177_s12, %s231_s13  ;;  %p236_p9 = scmp.lt.s32.totalorder %s177_s12, %s177_s12 }
  0xf4   :  { %p237_p10 = scmp.lt.s32.totalorder %s235_s5, %s231_s13 }
  0xf6   :  { %p238_p11 = por %p237_p10, %p236_p9 }
  0xf8   :  { %p239_p12 = pnand %p238_p11, %p232_p8 }
 0x174   :  { %v156_v37 = vpop.xlane.xlu1 %155 }
 0x175   :  { %v157_v38 = vrot.slane %v156_v37, 4 }
 0x177   :  { %v158_v39 = vadd.f32 %v157_v38, %v156_v37 }
 0x179   :  { %v159_v40 = vrot.slane %v158_v39, 2 }
 0x17b   :  { %v160_v41 = vadd.f32 %v159_v40, %v158_v39 }
 0x17d   :  { %v161_v42 = vrot.slane %v160_v41, 1 }
 0x17f   :  { %v162_v43 = vadd.f32 %v161_v42, %v160_v41 }
 0x181   :  { %198 = vpush %v162_v43 }
 0x1b2   :  { %s199_s10 = spop %198 }
 0x1b3   :  { %v164_v44 = vstv %s199_s10 }
 0x1b4   :  { %v166_v45 = vmul.f32 0.125, %v164_v44 }
 0x1b6   :  { %v167_v46 = vsub.f32 0.0, %v166_v45 }
 0x1b8   :  { %169 = vst.msk [vmem:[#allocation2] sm:$0x1] %vm168_vm2, %v167_v46 }
 0x1b9   :  { %242 = shalt.err (!%p239_p12)
}
 0x1ba   :  { %s243_s16 = scalar_lea.hbm %s332_s4, 16 }
 0x1bb   :  { %p244_p13 = scmp.ne.s32.totalorder %s332_s4, %s243_s16  ;;  %p247_p0 = scmp.lt.u32.totalorder %s243_s16, %s332_s4 }
 0x1bd   :  { %p249_p1 = pnand %p247_p0, %p244_p13 }
 0x1bf   :  { %252 = shalt.err (!%p249_p1)
}
 0x1c0   :  { %179 = dma.vmem_to_hbm [thread:$0]  %s177_s12, 16, %s332_s4, [#allocation3]  }
 0x1c1   :  { %253 = dma.done.wait [#allocation3], 16  }
 0x1c2   :  { %254 = vsyncadd [#allocation3], 4294967280 }
 0x1c3   :  { %255 = dma.done.wait [#allocation5], 16  }
 0x1c4   :  { %256 = vsyncadd [#allocation5], 4294967280 }
 0x1c5   :  { %196 = vsyncpa [#allocation3], 1 }
 0x1c6   :  { %197 = vsyncpa [#allocation5], 1 }

</bundles_post_ra>
